<compile_context>
chip_gen: v7x
topology: tpu7x:2x2x1
jax: 0.10.0
libtpu: 0.0.40
codegen_flags: <defaults>
</compile_context>

<pallas_src>
import functools

import jax
import jax.numpy as jnp
from jax.experimental import pallas as pl
from jax.experimental.pallas import tpu as pltpu

_U24 = 1 << 24  # Bernoulli compare done in an exact 24-bit integer domain.


def _make_boolean_flag_kernel(threshold_u24: int):
    """flag = ((bits >> 8) < threshold).  Pure scalar/SMEM work, no grid, no VMEM."""

    def kernel(bits_ref, flag_ref):
        # bits_ref: (1,) int32 in SMEM carrying 32 raw random bits.
        u24 = jax.lax.shift_right_logical(bits_ref[0], jnp.int32(8))  # uniform in [0, 2^24)
        flag_ref[0] = jnp.where(u24 < threshold_u24, jnp.int32(1), jnp.int32(0))

    return kernel


@functools.lru_cache(maxsize=None)
def _build_flag_fn(threshold_u24: int):
    call = pl.pallas_call(
        _make_boolean_flag_kernel(threshold_u24),
        out_shape=jax.ShapeDtypeStruct((1,), jnp.int32),
        in_specs=[pl.BlockSpec(memory_space=pltpu.MemorySpace.SMEM)],
        out_specs=pl.BlockSpec(memory_space=pltpu.MemorySpace.SMEM),
    )

    @jax.jit
    def fn(rng_key):
        bits = jax.random.bits(rng_key, (1,), dtype=jnp.uint32)
        bits_i32 = jax.lax.bitcast_convert_type(bits, jnp.int32)
        return call(bits_i32).astype(jnp.bool_)

    return fn


def boolean_flag_pallas(dropout_rate, rng_key):
    """Samples bernoulli(1 - dropout_rate); returns a bool array of shape (1,)."""
    p_keep = 1.0 - float(dropout_rate)
    threshold = int(round(p_keep * _U24))
    threshold = max(0, min(_U24, threshold))  # rate=0 -> always True, rate=1 -> always False
    return _build_flag_fn(threshold)(rng_key)


class BooleanFlagPallas:
    """Minimal JAX mirror of NeMo's BooleanFlag (AbstractEmbModel subclass)."""

    def __init__(self, output_key=None, dropout_rate=0.0, input_key=None):
        self.output_key = output_key
        self.input_key = input_key
        self.dropout_rate = dropout_rate
        self.flag = None
        # TODO(synk): summary()/count_params()/is_trainable bookkeeping is pure-Python
        # metadata with no compute; not translated to a kernel.

    def random_dropout_input(self, in_tensor, dropout_rate=None, key=None, rng_key=None):
        del key  # matches the torch signature (string key, unused)
        rate = dropout_rate if dropout_rate is not None else self.dropout_rate
        if rng_key is None:
            # NOTE: torch.bernoulli advances a global RNG; in JAX the caller must pass
            # a fresh rng_key per step for the flag to vary across invocations.
            rng_key = jax.random.PRNGKey(0)
        self.flag = boolean_flag_pallas(rate, rng_key)
        # Identity pass-through: do NOT copy x through the kernel (saves the full
        # HBM->VMEM->HBM round-trip and any VMEM footprint for the tensor).
        return in_tensor

    def forward(self, *args, **kwargs):
        del args, kwargs
        key = self.output_key if self.output_key else self.input_key
        return {key: self.flag}


if __name__ == "__main__":
    root = jax.random.PRNGKey(0)
    kx, kflag = jax.random.split(root)
    x = jax.random.normal(kx, (2, 4, 16, 16), dtype=jnp.float32)  # NCHW

    module = BooleanFlagPallas(output_key="use_flag", dropout_rate=0.2)
    x_out = module.random_dropout_input(x, rng_key=kflag)
    out = module.forward()

    jax.block_until_ready((x_out, out["use_flag"]))

    assert x_out.shape == x.shape and x_out.dtype == x.dtype
    assert bool(jnp.array_equal(x_out, x)), "pass-through must return input unchanged"
    assert out["use_flag"].shape == (1,) and out["use_flag"].dtype == jnp.bool_

    # Edge-case sanity: dropout_rate = 0 -> always True; dropout_rate = 1 -> always False.
    assert bool(boolean_flag_pallas(0.0, kflag)[0]) is True
    assert bool(boolean_flag_pallas(1.0, kflag)[0]) is False

    print("KERNEL_OK")
</pallas_src>

<mosaic_0001>
module attributes {stable_mosaic.version = 11 : i64} {
  func.func @kernel(%arg0: memref<1xi32, #tpu.memory_space<smem>>, %arg1: memref<1xi32, #tpu.memory_space<smem>>) attributes {dimension_semantics = [], scalar_prefetch = 0 : i64, scratch_operands = 0 : i64, tpu.core_type = #tpu.core_type<tc>} {
    %c0 = arith.constant 0 : index
    %0 = memref.load %arg0[%c0] : memref<1xi32, #tpu.memory_space<smem>>
    %c8_i32 = arith.constant 8 : i32
    %1 = arith.shrui %0, %c8_i32 : i32
    %c13421773_i32 = arith.constant 13421773 : i32
    %2 = arith.cmpi slt, %1, %c13421773_i32 : i32
    %c1_i32 = arith.constant 1 : i32
    %c0_i32 = arith.constant 0 : i32
    %3 = arith.select %2, %c1_i32, %c0_i32 : i32
    %c0_0 = arith.constant 0 : index
    %4 = memref.load %arg1[%c0_0] : memref<1xi32, #tpu.memory_space<smem>>
    memref.store %3, %arg1[%c0_0] : memref<1xi32, #tpu.memory_space<smem>>
    return
  }
}

</mosaic_0001>

<bundles_post_ra>
// kernel: fn.1
= control target key start
LH: loop header
LB: loop body
LE: loop exit
PB: predicated region body
PF: predicated region fallthrough
CT: control target
= control target key end

     0   :  { %7 = vsyncpa [#allocation4], 0  ;;  %s68_s0 = inlined_call_operand.<no memory space> [shape: s32[1], index: 0, kind: input, shape index: {}]   ;;  %s69_s1 = inlined_call_operand.hbm [shape: s32[1], index: 1, kind: output, shape index: {}]  }
   0x1   :  { %s11_s8 = sshrl.u32 %s68_s0, 8  ;;  %s30_s12 = scalar_lea.hbm %s69_s1, 16 }
   0x2   :  { %p12_p0 = scmp.lt.s32.totalorder %s11_s8, 13421773  ;;  %p31_p1 = scmp.ne.s32.totalorder %s69_s1, %s30_s12 }
   0x3   :  { %p34_p2 = scmp.lt.u32.totalorder %s30_s12, %s69_s1 }
   0x4   :  { %s13_s9 = scalar_select %p12_p0, 1, 0 }
   0x5   :  { %p36_p3 = pnand %p34_p2, %p31_p1 }
   0x6   :  { %15 = sst [smem:[#allocation3]] %s13_s9 }
   0x7   :  { %39 = shalt.err (!%p36_p3)
}
   0x8   :  { %s42_s17 = smov [#allocation3]  }
   0x9   :  { %23 = dma.smem_to_hbm %s42_s17, 16, %s69_s1, [#allocation4]  }
   0xa   :  { %40 = dma.done.wait [#allocation4], 16  }
   0xb   :  { %41 = vsyncadd [#allocation4], 4294967280 }
   0xc   :  { %27 = sfence }
   0xd   :  { %28 = vsyncpa [#allocation4], 1 }

</bundles_post_ra>
